<compile_context>
chip_gen: v7x
topology: tpu7x:2x2x1
jax: 0.10.0
libtpu: 0.0.40
codegen_flags: <defaults>
</compile_context>

<pallas_src>
import functools

import jax
import jax.numpy as jnp
import numpy as np
from jax import lax
from jax.experimental import pallas as pl
from jax.experimental.pallas import tpu as pltpu


# ---------------------------------------------------------------------------
# Kernels
# ---------------------------------------------------------------------------
def _focal_conv_kernel_3d(x_ref, w_ref, o_ref):
    """Preferred kernel: rank-3 lhs feeds the MXU directly (no reshape).

    x_ref: (Bt, Hp_pad, Kp)    H-padded / sublane-aligned input block
    w_ref: (KH, Kp, Tn)        banded conv weight block (resident across i)
    o_ref: (Bt, Ho, Tn)        lane-dense output block
    """
    kh_total = w_ref.shape[0]
    ho = o_ref.shape[1]
    acc = jnp.zeros(o_ref.shape, jnp.float32)
    for kh in range(kh_total):                      # KH small & static -> unrolled
        acc = acc + lax.dot_general(
            x_ref[:, kh:kh + ho, :], w_ref[kh],
            dimension_numbers=(((2,), (0,)), ((), ())),
            preferred_element_type=jnp.float32)
    o_ref[...] = acc.astype(o_ref.dtype)


def _focal_conv_kernel_2d(x_ref, w_ref, o_ref):
    """Fallback kernel (rank-2 dots only, known-good lowering).

    x_ref: (Bt, Hp_pad, Kp)   w_ref: (KH, Kp, Tn)   o_ref: (Bt*Ho, Tn)
    """
    bt = x_ref.shape[0]
    kp = x_ref.shape[2]
    kh_total = w_ref.shape[0]
    m, _ = o_ref.shape
    ho = m // bt
    acc = jnp.zeros(o_ref.shape, jnp.float32)
    for kh in range(kh_total):
        patch = x_ref[:, kh:kh + ho, :].reshape(m, kp)
        acc = acc + jnp.dot(patch, w_ref[kh], preferred_element_type=jnp.float32)
    o_ref[...] = acc.astype(o_ref.dtype)


# ---------------------------------------------------------------------------
# One-time capability probe: does Mosaic lower a rank-3 x rank-2 dot_general?
# ---------------------------------------------------------------------------
@functools.lru_cache(maxsize=None)
def _supports_rank3_dot(dtype_name):
    dtype = jnp.dtype(dtype_name)
    bt, hp, ho, kp, tn = 2, 8, 4, 128, 128

    def probe(x_ref, w_ref, o_ref):
        o_ref[...] = lax.dot_general(
            x_ref[:, 1:1 + ho, :], w_ref[...],
            dimension_numbers=(((2,), (0,)), ((), ())),
            preferred_element_type=jnp.float32)

    try:
        # Small integers: exactly representable in bf16/f32 -> exact comparison.
        xi = np.asarray((np.arange(bt * hp * kp) % 7) - 3,
                        np.int32).reshape(bt, hp, kp)
        wi = np.asarray((np.arange(kp * tn) % 5) - 2,
                        np.int32).reshape(kp, tn)
        x = jnp.asarray(xi).astype(dtype)
        wgt = jnp.asarray(wi).astype(dtype)
        out = pl.pallas_call(
            probe,
            out_shape=jax.ShapeDtypeStruct((bt, ho, tn), jnp.float32),
        )(x, wgt)
        out = np.asarray(jax.block_until_ready(out))
        ref = np.einsum("bhk,kn->bhn",
                        xi[:, 1:1 + ho, :].astype(np.float32),
                        wi.astype(np.float32))
        return bool(np.allclose(out, ref, rtol=1e-5, atol=1e-5))
    except Exception:
        return False


# ---------------------------------------------------------------------------
# Helpers
# ---------------------------------------------------------------------------
def _round_up(x, m):
    return ((x + m - 1) // m) * m


def _band_weight(weight_oihw, w_in, w_out, padding, k_pad, dtype):
    """Fold the W-axis convolution (incl. zero padding) into a banded matrix.

    band[kh, wi*Cin + c, wo*Cout + co] = weight[co, c, kh, kw]
    whenever wi == wo + kw - padding is a valid input column, else 0.
    Rows are zero-padded up to k_pad so the contraction dim is lane-dense.
    """
    c_out, c_in, k_h, k_w = weight_oihw.shape
    w_t = jnp.transpose(weight_oihw, (2, 3, 1, 0)).astype(jnp.float32)  # (KH,KW,Cin,Cout)
    rows = jnp.arange(w_in)[:, None]
    cols = jnp.arange(w_out)[None, :]
    band = jnp.zeros((k_h, w_in * c_in, w_out * c_out), jnp.float32)
    for kw in range(k_w):
        sel = (rows == cols + (kw - padding)).astype(jnp.float32)       # (W, Wo)
        blk = jnp.einsum("wo,kcd->kwcod", sel, w_t[:, kw])              # (KH,W,Cin,Wo,Cout)
        band = band + blk.reshape(k_h, w_in * c_in, w_out * c_out)
    if k_pad > w_in * c_in:
        band = jnp.pad(band, ((0, 0), (0, k_pad - w_in * c_in), (0, 0)))
    return band.astype(dtype)


def _tpu_vmem_bytes():
    try:
        return int(pltpu.get_tpu_info().vmem_capacity_bytes)
    except Exception:
        return 64 * 1024 * 1024        # conservative (v7x per-TC) fallback


def _prefer_multi_step():
    """v5e/v6e have a single TensorCore: one big block beats splitting.
    Other generations (v4/v5p/v7x megacore) keep >= 2 parallel grid steps."""
    try:
        kind = jax.devices()[0].device_kind.lower()
    except Exception:
        return True
    return not ("lite" in kind or "v5e" in kind or "v6e" in kind)


def _choose_tn(n_dim):
    """Tile n_dim = Wo*Cout into lane-dense (<=512) weight/output blocks."""
    if n_dim % 128 != 0 or n_dim <= 512:
        return n_dim
    for tn in range(512, 127, -128):
        if n_dim % tn == 0:
            return tn
    return n_dim


def _choose_bt(batch, ho, per_chunk_in, per_chunk_out, weight_block,
               acc_per_chunk, budget, prefer_multi_step):
    """Pick chunk-images per step: divisor of batch, 8-sublane-aligned M for the
    2D fallback store, fits the (weight + acc inclusive) VMEM budget, bounded
    live accumulator, and >=2 parallel steps on multi-TC chips when possible."""
    def aligned(bt):
        return (bt * ho) % 8 == 0 or bt == batch

    def footprint(bt):
        return (2 * bt * per_chunk_in          # double-buffered input block
                + 2 * bt * per_chunk_out       # double-buffered output block
                + 2 * weight_block             # resident band-weight block
                + bt * acc_per_chunk)          # live f32 accumulator

    divisors = [bt for bt in range(1, batch + 1) if batch % bt == 0]
    cands = [bt for bt in divisors
             if aligned(bt)
             and footprint(bt) <= budget
             and bt * acc_per_chunk <= 64 * 1024]
    if not cands:
        # Nothing fits the budget: take the smallest aligned block (VMEM-min).
        return min(bt for bt in divisors if aligned(bt))
    if prefer_multi_step:
        multi = [bt for bt in cands if batch // bt >= 2]
        if multi:
            return max(multi)
    return max(cands)


# ---------------------------------------------------------------------------
# Public entry point
# ---------------------------------------------------------------------------
def focal_conv2d(x_nchw, weight_oihw, *, halving, padding,
                 compute_dtype=jnp.bfloat16):
    """FocalConv2d forward. x: NCHW, weight: (Cout, Cin, KH, KW)."""
    dtype_name = jnp.dtype(compute_dtype).name
    use_3d = _supports_rank3_dot(dtype_name)
    return _focal_conv2d_impl(x_nchw, weight_oihw, halving=int(halving),
                              padding=int(padding), compute_dtype=dtype_name,
                              use_3d=use_3d)


@functools.partial(jax.jit,
                   static_argnames=("halving", "padding", "compute_dtype",
                                    "use_3d"))
def _focal_conv2d_impl(x_nchw, weight_oihw, *, halving, padding,
                       compute_dtype, use_3d):
    n, c, h, w = x_nchw.shape
    c_out, c_in, k_h, k_w = weight_oihw.shape
    assert c == c_in
    out_dtype = x_nchw.dtype
    compute_dtype = jnp.dtype(compute_dtype)

    n_chunks = 1 if halving == 0 else 2 ** halving
    split = h // n_chunks
    assert split * n_chunks == h, "H must be divisible by 2**halving"

    hp = split + 2 * padding
    hp_pad = _round_up(hp, 8)                 # whole sublane tiles per chunk slab
    ho = hp - k_h + 1                         # stride = 1
    wo = w + 2 * padding - k_w + 1
    assert ho > 0 and wo > 0

    b = n * n_chunks                          # chunk-images folded into batch
    k_dim = w * c_in
    k_pad = _round_up(k_dim, 128)             # lane-dense contraction dim
    n_dim = wo * c_out                        # lane-dense output width
    tn = _choose_tn(n_dim)

    # One fused XLA pass over x: fold chunks into batch, (W, Cin) onto lanes,
    # zero-pad H (conv halo + 8-sublane alignment) and the lane tail, in bf16.
    xc = x_nchw.astype(compute_dtype)
    xc = xc.reshape(n, c_in, n_chunks, split, w)
    xc = jnp.transpose(xc, (0, 2, 3, 4, 1)).reshape(b, split, k_dim)
    xc = jnp.pad(xc, ((0, 0),
                      (padding, hp_pad - split - padding),
                      (0, k_pad - k_dim)))

    band = _band_weight(weight_oihw, w, wo, padding, k_pad, compute_dtype)

    in_item = compute_dtype.itemsize
    out_item = jnp.dtype(out_dtype).itemsize

    vmem_cap = _tpu_vmem_bytes()
    vmem_limit = max(32 * 1024 * 1024, min(int(0.75 * vmem_cap),
                                           96 * 1024 * 1024))
    budget = int(0.8 * vmem_limit)

    bt = _choose_bt(
        b, ho,
        per_chunk_in=hp_pad * k_pad * in_item,
        per_chunk_out=ho * tn * out_item,
        weight_block=k_h * k_pad * tn * in_item,
        acc_per_chunk=ho * tn * 4,
        budget=budget,
        prefer_multi_step=_prefer_multi_step())
    grid = (b // bt, n_dim // tn)

    cost = pl.CostEstimate(
        flops=2 * b * ho * k_h * k_pad * n_dim,
        transcendentals=0,
        bytes_accessed=(xc.size * in_item + band.size * in_item
                        + b * ho * n_dim * out_item))

    in_specs = [
        pl.BlockSpec((bt, hp_pad, k_pad), lambda i, j: (i, 0, 0)),
        pl.BlockSpec((k_h, k_pad, tn), lambda i, j: (0, 0, j)),
    ]
    if use_3d:
        kernel = _focal_conv_kernel_3d
        out_shape = jax.ShapeDtypeStruct((b, ho, n_dim), out_dtype)
        out_spec = pl.BlockSpec((bt, ho, tn), lambda i, j: (i, 0, j))
    else:
        kernel = _focal_conv_kernel_2d
        out_shape = jax.ShapeDtypeStruct((b * ho, n_dim), out_dtype)
        out_spec = pl.BlockSpec((bt * ho, tn), lambda i, j: (i, j))

    y = pl.pallas_call(
        kernel,
        out_shape=out_shape,
        grid_spec=pltpu.PrefetchScalarGridSpec(
            num_scalar_prefetch=0,
            grid=grid,
            in_specs=in_specs,
            out_specs=out_spec),
        compiler_params=pltpu.CompilerParams(
            dimension_semantics=("parallel", "parallel"),
            vmem_limit_bytes=vmem_limit),
        cost_estimate=cost,
    )(xc, band)

    # (b, Ho, Wo*Cout) [or (b*Ho, Wo*Cout)] -> NCHW with chunks stacked along H.
    y = y.reshape(n, n_chunks, ho, wo, c_out)
    y = jnp.transpose(y, (0, 4, 1, 2, 3)).reshape(n, c_out, n_chunks * ho, wo)
    return y


# ---------------------------------------------------------------------------
# Pure-JAX reference (mirrors the PyTorch module: split -> conv -> cat)
# ---------------------------------------------------------------------------
def _reference(x_nchw, weight_oihw, halving, padding):
    def conv(chunk):
        return lax.conv_general_dilated(
            chunk, weight_oihw, window_strides=(1, 1),
            padding=[(padding, padding), (padding, padding)],
            dimension_numbers=("NCHW", "OIHW", "NCHW"))
    if halving == 0:
        return conv(x_nchw)
    h = x_nchw.shape[2]
    split = h // 2 ** halving
    chunks = [x_nchw[:, :, i * split:(i + 1) * split, :]
              for i in range(2 ** halving)]
    return jnp.concatenate([conv(c) for c in chunks], axis=2)


if __name__ == "__main__":
    # module config
    in_channels, out_channels = 4, 8
    kernel_size, padding, halving = 3, 1, 2

    key = jax.random.PRNGKey(0)
    kx, kw = jax.random.split(key)
    x = jax.random.normal(kx, (2, in_channels, 16, 16), dtype=jnp.float32)
    # deterministic synthetic conv weight (PyTorch shape: Cout, Cin, KH, KW)
    weight = jax.random.normal(
        kw, (out_channels, in_channels, kernel_size, kernel_size),
        dtype=jnp.float32) * 0.1

    y = focal_conv2d(x, weight, halving=halving, padding=padding)  # bf16 compute
    y = jax.block_until_ready(y)

    # Kernel vs. reference on bf16-quantized inputs: isolates kernel correctness
    # from the intentional bf16 input quantization (differences ~ f32 accum order).
    xq = x.astype(jnp.bfloat16).astype(jnp.float32)
    wq = weight.astype(jnp.bfloat16).astype(jnp.float32)
    y_ref_q = _reference(xq, wq, halving, padding)
    np.testing.assert_allclose(np.asarray(y), np.asarray(y_ref_q),
                               rtol=5e-3, atol=5e-3)

    # Kernel vs. the full-f32 module semantics (tolerance covers bf16 inputs).
    y_ref = _reference(x, weight, halving, padding)
    np.testing.assert_allclose(np.asarray(y), np.asarray(y_ref),
                               rtol=5e-2, atol=5e-2)
    print("KERNEL_OK")
</pallas_src>

<mosaic_0001>
module attributes {stable_mosaic.version = 11 : i64} {
  func.func @probe(%arg0: memref<2x8x128xbf16, #tpu.memory_space<vmem>>, %arg1: memref<128x128xbf16, #tpu.memory_space<vmem>>, %arg2: memref<2x4x128xf32, #tpu.memory_space<vmem>>) attributes {dimension_semantics = [], scalar_prefetch = 0 : i64, scratch_operands = 0 : i64, tpu.core_type = #tpu.core_type<tc>} {
    %c0 = arith.constant 0 : index
    %c1 = arith.constant 1 : index
    %c0_0 = arith.constant 0 : index
    %0 = vector.load %arg0[%c0, %c1, %c0_0] : memref<2x8x128xbf16, #tpu.memory_space<vmem>>, vector<2x4x128xbf16>
    %c0_1 = arith.constant 0 : index
    %c0_2 = arith.constant 0 : index
    %1 = vector.load %arg1[%c0_1, %c0_2] : memref<128x128xbf16, #tpu.memory_space<vmem>>, vector<128x128xbf16>
    %cst = arith.constant dense<0.000000e+00> : vector<2x4x128xf32>
    %2 = tpu.matmul %0, %1, %cst {dimension_numbers = #tpu.dot_dimension_numbers<[2], [0], [0, 1], [1], [0, 0, 0, 1, 1, 1], [], []>} : vector<2x4x128xbf16>, vector<128x128xbf16>, vector<2x4x128xf32> -> vector<2x4x128xf32>
    %c0_3 = arith.constant 0 : index
    %c0_4 = arith.constant 0 : index
    %c0_5 = arith.constant 0 : index
    %3 = vector.load %arg2[%c0_3, %c0_4, %c0_5] : memref<2x4x128xf32, #tpu.memory_space<vmem>>, vector<2x4x128xf32>
    tpu.vector_store %arg2[%c0_3, %c0_4, %c0_5], %2 {strides = array<i32>} : memref<2x4x128xf32, #tpu.memory_space<vmem>>, vector<2x4x128xf32>,
    return
  }
}

module attributes {stable_mosaic.version = 11 : i64} {
  func.func @_focal_conv_kernel_2d(%arg0: i32, %arg1: i32, %arg2: memref<4x8x128xbf16, #tpu.memory_space<vmem>>, %arg3: memref<3x128x128xbf16, #tpu.memory_space<vmem>>, %arg4: memref<16x128xf32, #tpu.memory_space<vmem>>) attributes {dimension_semantics = [#tpu.dimension_semantics<parallel>, #tpu.dimension_semantics<parallel>], iteration_bounds = array<i64: 2, 1>, scalar_prefetch = 0 : i64, scratch_operands = 0 : i64, tpu.core_type = #tpu.core_type<tc>, window_params = [{transform_indices = @transform_0, window_bounds = array<i64: 4, 8, 128>}, {transform_indices = @transform_1, window_bounds = array<i64: 3, 128, 128>}, {transform_indices = @transform_2, window_bounds = array<i64: 16, 128>}]} {
    %cst = arith.constant 0.000000e+00 : f32
    %0 = vector.broadcast %cst : f32 to vector<16x128xf32>
    %c0 = arith.constant 0 : index
    %c0_0 = arith.constant 0 : index
    %c0_1 = arith.constant 0 : index
    %1 = vector.load %arg2[%c0, %c0_0, %c0_1] : memref<4x8x128xbf16, #tpu.memory_space<vmem>>, vector<4x4x128xbf16>
    %2 = vector.shape_cast %1 : vector<4x4x128xbf16> to vector<16x128xbf16>
    %c0_2 = arith.constant 0 : index
    %c0_3 = arith.constant 0 : index
    %c0_4 = arith.constant 0 : index
    %3 = vector.load %arg3[%c0_2, %c0_3, %c0_4] : memref<3x128x128xbf16, #tpu.memory_space<vmem>>, vector<1x128x128xbf16>
    %4 = vector.shape_cast %3 : vector<1x128x128xbf16> to vector<128x128xbf16>
    %cst_5 = arith.constant dense<0.000000e+00> : vector<16x128xf32>
    %5 = tpu.matmul %2, %4, %cst_5 {dimension_numbers = #tpu.dot_dimension_numbers<[1], [0], [0], [1], [0, 0, 1, 1], [], []>} : vector<16x128xbf16>, vector<128x128xbf16>, vector<16x128xf32> -> vector<16x128xf32>
    %6 = arith.addf %0, %5 : vector<16x128xf32>
    %c0_6 = arith.constant 0 : index
    %c1 = arith.constant 1 : index
    %c0_7 = arith.constant 0 : index
    %7 = vector.load %arg2[%c0_6, %c1, %c0_7] : memref<4x8x128xbf16, #tpu.memory_space<vmem>>, vector<4x4x128xbf16>
    %8 = vector.shape_cast %7 : vector<4x4x128xbf16> to vector<16x128xbf16>
    %c1_8 = arith.constant 1 : index
    %c0_9 = arith.constant 0 : index
    %c0_10 = arith.constant 0 : index
    %9 = vector.load %arg3[%c1_8, %c0_9, %c0_10] : memref<3x128x128xbf16, #tpu.memory_space<vmem>>, vector<1x128x128xbf16>
    %10 = vector.shape_cast %9 : vector<1x128x128xbf16> to vector<128x128xbf16>
    %cst_11 = arith.constant dense<0.000000e+00> : vector<16x128xf32>
    %11 = tpu.matmul %8, %10, %cst_11 {dimension_numbers = #tpu.dot_dimension_numbers<[1], [0], [0], [1], [0, 0, 1, 1], [], []>} : vector<16x128xbf16>, vector<128x128xbf16>, vector<16x128xf32> -> vector<16x128xf32>
    %12 = arith.addf %6, %11 : vector<16x128xf32>
    %c0_12 = arith.constant 0 : index
    %c2 = arith.constant 2 : index
    %c0_13 = arith.constant 0 : index
    %13 = vector.load %arg2[%c0_12, %c2, %c0_13] : memref<4x8x128xbf16, #tpu.memory_space<vmem>>, vector<4x4x128xbf16>
    %14 = vector.shape_cast %13 : vector<4x4x128xbf16> to vector<16x128xbf16>
    %c2_14 = arith.constant 2 : index
    %c0_15 = arith.constant 0 : index
    %c0_16 = arith.constant 0 : index
    %15 = vector.load %arg3[%c2_14, %c0_15, %c0_16] : memref<3x128x128xbf16, #tpu.memory_space<vmem>>, vector<1x128x128xbf16>
    %16 = vector.shape_cast %15 : vector<1x128x128xbf16> to vector<128x128xbf16>
    %cst_17 = arith.constant dense<0.000000e+00> : vector<16x128xf32>
    %17 = tpu.matmul %14, %16, %cst_17 {dimension_numbers = #tpu.dot_dimension_numbers<[1], [0], [0], [1], [0, 0, 1, 1], [], []>} : vector<16x128xbf16>, vector<128x128xbf16>, vector<16x128xf32> -> vector<16x128xf32>
    %18 = arith.addf %12, %17 : vector<16x128xf32>
    %c0_18 = arith.constant 0 : index
    %c0_19 = arith.constant 0 : index
    %19 = vector.load %arg4[%c0_18, %c0_19] : memref<16x128xf32, #tpu.memory_space<vmem>>, vector<16x128xf32>
    tpu.vector_store %arg4[%c0_18, %c0_19], %18 {strides = array<i32>} : memref<16x128xf32, #tpu.memory_space<vmem>>, vector<16x128xf32>,
    return
  }
  func.func @transform_0(%arg0: i32, %arg1: i32) -> (i32, i32, i32) {
    %c0_i32 = arith.constant 0 : i32
    %c0_i32_0 = arith.constant 0 : i32
    %c0_i32_1 = arith.constant 0 : i32
    return %arg0, %c0_i32, %c0_i32_0 : i32, i32, i32
  }
  func.func @transform_1(%arg0: i32, %arg1: i32) -> (i32, i32, i32) {
    %c0_i32 = arith.constant 0 : i32
    %c0_i32_0 = arith.constant 0 : i32
    %c0_i32_1 = arith.constant 0 : i32
    return %c0_i32, %c0_i32_0, %arg1 : i32, i32, i32
  }
  func.func @transform_2(%arg0: i32, %arg1: i32) -> (i32, i32) {
    %c0_i32 = arith.constant 0 : i32
    return %arg0, %arg1 : i32, i32
  }
}

</mosaic_0001>

<bundles_post_ra>
// kernel: tpu_custom_call.1
= control target key start
LH: loop header
LB: loop body
LE: loop exit
PB: predicated region body
PF: predicated region fallthrough
CT: control target
= control target key end

     0   :  { %7 = vsyncpa [#allocation3], 0  ;;  %s429_s0 = inlined_call_operand.hbm [shape: bf16[2,8,128], index: 0, kind: input, shape index: {}]   ;;  %s430_s1 = inlined_call_operand.hbm [shape: bf16[128,128], index: 1, kind: input, shape index: {}]   ;;  %s431_s2 = inlined_call_operand.hbm [shape: f32[2,4,128], index: 2, kind: output, shape index: {}]  }
   0x1   :  { %8 = vsyncpa [#allocation6], 0 }
   0x2   :  { %9 = vsyncpa [#allocation4], 0  ;;  %s359_s9 = smov [#allocation2]   ;;  %s287_s13 = scalar_lea.hbm %s429_s0, 128 }
   0x3   :  { %s15_s10 = sshll.u32 %s359_s9, 4  ;;  %p288_p0 = scmp.ne.s32.totalorder %s429_s0, %s287_s13  ;;  %s16_s10 = int_to_ptr.vmem [resolvable:$true] %s15_s10 }
   0x4   :  { %p291_p1 = scmp.lt.u32.totalorder %s287_s13, %s429_s0 }
   0x6   :  { %p293_p2 = pnand %p291_p1, %p288_p0 }
   0x8   :  { %296 = shalt.err (!%p293_p2)
}
   0x9   :  { %s297_s18 = scalar_lea.vmem %s16_s10, 128  ;;  %p302_p4 = scmp.lt.s32.totalorder %s16_s10, %s16_s10 }
   0xa   :  { %p298_p3 = scmp.ne.s32.totalorder %s16_s10, %s297_s18  ;;  %p303_p5 = scmp.lt.s32.totalorder %s297_s18, %s297_s18 }
   0xc   :  { %p304_p6 = por %p303_p5, %p302_p4 }
   0xe   :  { %p305_p7 = pnand %p304_p6, %p298_p3 }
  0x10   :  { %308 = shalt.err (!%p305_p7)
}
  0x11   :  { %s360_s19 = smov 64   ;;  %s361_s20 = smov 4  }
  0x12   :  { %21 = dma.hbm_to_vmem [thread:$0]  %s429_s0, 128, %s16_s10, [#allocation3], %s360_s19, %s360_s19, %s361_s20  }
  0x13   :  { %s362_s23 = smov [#allocation5]   ;;  %s309_s27 = scalar_lea.hbm %s430_s1, 1024 }
  0x14   :  { %s27_s24 = sshll.u32 %s362_s23, 4  ;;  %p310_p8 = scmp.ne.s32.totalorder %s430_s1, %s309_s27  ;;  %s28_s24 = int_to_ptr.vmem [resolvable:$true] %s27_s24 }
  0x15   :  { %p313_p9 = scmp.lt.u32.totalorder %s309_s27, %s430_s1 }
  0x17   :  { %p315_p10 = pnand %p313_p9, %p310_p8 }
  0x19   :  { %318 = shalt.err (!%p315_p10)
}
  0x1a   :  { %s319_s4 = scalar_lea.vmem %s28_s24, 1024  ;;  %p324_p12 = scmp.lt.s32.totalorder %s28_s24, %s28_s24 }
  0x1b   :  { %p320_p11 = scmp.ne.s32.totalorder %s28_s24, %s319_s4  ;;  %p325_p13 = scmp.lt.s32.totalorder %s319_s4, %s319_s4 }
  0x1d   :  { %p326_p0 = por %p325_p13, %p324_p12 }
  0x1f   :  { %p327_p1 = pnand %p326_p0, %p320_p11 }
  0x21   :  { %330 = shalt.err (!%p327_p1)
}
  0x22   :  { %33 = dma.hbm_to_vmem [thread:$0]  %s430_s1, 1024, %s28_s24, [#allocation6], %s360_s19, %s360_s19, %s361_s20  }
  0x23   :  { %353 = dma.done.wait [#allocation3], 128  }
  0x24   :  { %354 = vsyncadd [#allocation3], 4294967168 }
  0x25   :  { %355 = dma.done.wait [#allocation6], 1024  }
  0x26   :  { %356 = vsyncadd [#allocation6], 4294966272  ;;  %v363_v0 = vmov 0.0   ;;  %vm364_vm0 = vmmov 0   ;;  %v279_v1 = vld [vmem:[#allocation5] sm:$0xff]   ;;  %v280_v2 = vld [vmem:[#allocation5 + $0x8] sm:$0xff]   ;;  %v116_v24 = vlaneseq }
  0x27   :  { %251 = vmatprep.subr.bf16.mxu0 %v363_v0  ;;  %267 = vmatprep.mubr.msk.bf16.mxu0 %vm364_vm0, %v363_v0  ;;  %v281_v3 = vld [vmem:[#allocation5 + $0x10] sm:$0xff]   ;;  %vm77_vm1 = vsmask.f32 1280  ;;  %vm78_vm2 = vsmask.f32 3336  ;;  %v282_v8 = vld [vmem:[#allocation5 + $0x18] sm:$0xff]  }
  0x28   :  { %252 = vmatpush3.bf16.msra.mxu0 %v279_v1  ;;  %v232_v4 = vld.sshfl [vmem:[#allocation2] sm:$0x13 pattern:$0x76325410]  ;;  %vm79_vm3 = vmor %vm77_vm1, %vm78_vm2  ;;  %vm80_vm4 = vsmask.f32 5392 }
  0x29   :  { %253 = vmatprep.subr.bf16.mxu0 %v363_v0  ;;  %v233_v5 = vld.sshfl [vmem:[#allocation2 + $0x4] sm:$0x13 pattern:$0x76325410]  ;;  %v85_v6 = vshrl.u32 %v232_v4, 16  ;;  %v88_v7 = vshll.u32 %v232_v4, 16  ;;  %v68_v9 = vcombine.high %v232_v4, %v232_v4  ;;  %vm81_vm5 = vmor %vm79_vm3, %vm80_vm4 }
  0x2a   :  { %v76_v10 = vcombine.high %v233_v5, %v233_v5  ;;  %v99_v11 = vshrl.u32 %v233_v5, 16  ;;  %v102_v12 = vshll.u32 %v233_v5, 16  ;;  %v283_v17 = vld [vmem:[#allocation5 + $0x20] sm:$0xff]   ;;  %vm82_vm6 = vsmask.f32 7448  ;;  %v284_v25 = vld [vmem:[#allocation5 + $0x28] sm:$0xff]  }
  0x2b   :  { %v87_v13 = vrot.slane %v85_v6, 6  ;;  %v90_v14 = vrot.slane %v88_v7, 7  ;;  %v94_v19 = vshll.u32 %v68_v9, 16  ;;  %v365_v22 = vmov 1983009808   ;;  %vm83_vm7 = vmor %vm81_vm5, %vm82_vm6  ;;  %v285_v32 = vld [vmem:[#allocation5 + $0x30] sm:$0xff]  }
  0x2c   :  { %254 = vmatpush3.bf16.msra.mxu0 %v280_v2  ;;  %v101_v15 = vrot.slane %v99_v11, 6  ;;  %v104_v16 = vrot.slane %v102_v12, 7  ;;  %v108_v21 = vshll.u32 %v76_v10, 16  ;;  %v114_v23 = vunpack.c.l.s4 %v365_v22  ;;  %v286_v37 = vld [vmem:[#allocation5 + $0x38] sm:$0xff]   ;;  %s366_s1 = smov [#allocation7]  }
  0x2d   :  { %255 = vmatprep.subr.bf16.mxu0 %v363_v0  ;;  %v91_v18 = vor.u32 %v90_v14, %v87_v13  ;;  %v96_v27 = vrot.slane %v94_v19, 7  ;;  %v117_v31 = vshrl.u32 %v116_v24, 7  ;;  %s219_s6 = sshll.u32 %s366_s1, 4  ;;  %s220_s6 = int_to_ptr.vmem [resolvable:$true] %s219_s6 }
  0x2e   :  { %v105_v20 = vor.u32 %v104_v16, %v101_v15  ;;  %v110_v29 = vrot.slane %v108_v21, 7  ;;  %v115_v30 = vunpack.c.0.s8 %v114_v23  ;;  %s331_s7 = scalar_lea.vmem %s220_s6, 128  ;;  %p336_p3 = scmp.lt.s32.totalorder %s220_s6, %s220_s6 }
  0x2f   :  { %v92_v26 = vrot.slane %v91_v18, 2  ;;  %p332_p2 = scmp.ne.s32.totalorder %s220_s6, %s331_s7  ;;  %p337_p4 = scmp.lt.s32.totalorder %s331_s7, %s331_s7 }
  0x30   :  { %256 = vmatpush3.bf16.msra.mxu0 %v281_v3  ;;  %v106_v28 = vrot.slane %v105_v20, 2  ;;  %v118_v36 = vsub.s32 %v115_v30, %v117_v31 }
  0x31   :  { %257 = vmatprep.subr.bf16.mxu0 %v363_v0  ;;  %v97_v33 = vsel %vm83_vm7, %v92_v26, %v96_v27  ;;  %p338_p5 = por %p337_p4, %p336_p3 }
  0x32   :  { %v111_v34 = vsel %vm83_vm7, %v106_v28, %v110_v29 }
  0x33   :  { %v112_v35 = vcombine.low %v97_v33, %v111_v34  ;;  %p339_p6 = pnand %p338_p5, %p332_p2 }
  0x34   :  { %258 = vmatpush3.bf16.msra.mxu0 %v282_v8 }
  0x35   :  { %259 = vmatprep.subr.bf16.mxu0 %v363_v0  ;;  %v119_v38 = vrot.slane %v112_v35, %v118_v36 }
  0x38   :  { %260 = vmatpush3.bf16.msra.mxu0 %v283_v17 }
  0x39   :  { %261 = vmatprep.subr.bf16.mxu0 %v363_v0 }
  0x3c   :  { %262 = vmatpush3.bf16.msra.mxu0 %v284_v25 }
  0x3d   :  { %263 = vmatprep.subr.bf16.mxu0 %v363_v0 }
  0x40   :  { %264 = vmatpush3.bf16.msra.mxu0 %v285_v32 }
  0x41   :  { %265 = vmatprep.subr.bf16.mxu0 %v363_v0 }
  0x44   :  { %266 = vmatpush3.bf16.msra.mxu0 %v286_v37 }
  0x47   :  { %268 = vmatmul.mubr.bf16.vlgmr.msra.gmra.mrb[0].mxu0 %v119_v38 }
 0x11a   :  { %v203_v39 = vpop.f32.mrb[0].mxu0 }
 0x11b   :  { %v210_v40 = vcombine.high %v203_v39, %v203_v39  ;;  %212 = vst [vmem:[#allocation7] sm:$0xf] %v203_v39  ;;  %v269_v41 = vpop.f32.mrb[1].mxu0 }
 0x11c   :  { %v206_v42 = vpop.f32.mrb[2].mxu0 }
 0x11d   :  { %213 = vst [vmem:[#allocation7 + $0x4] sm:$0xf] %v210_v40  ;;  %v270_v43 = vpop.f32.mrb[3].mxu0 }
 0x11e   :  { %342 = shalt.err (!%p339_p6)
}
 0x11f   :  { %s343_s10 = scalar_lea.hbm %s431_s2, 128 }
 0x120   :  { %p344_p7 = scmp.ne.s32.totalorder %s431_s2, %s343_s10  ;;  %p347_p8 = scmp.lt.u32.totalorder %s343_s10, %s431_s2 }
 0x122   :  { %p349_p9 = pnand %p347_p8, %p344_p7 }
 0x124   :  { %352 = shalt.err (!%p349_p9)
}
 0x125   :  { %225 = dma.vmem_to_hbm [thread:$0]  %s220_s6, 128, %s431_s2, [#allocation4], %s360_s19, %s360_s19, %s361_s20  }
 0x126   :  { %357 = dma.done.wait [#allocation4], 128  }
 0x127   :  { %358 = vsyncadd [#allocation4], 4294967168 }
 0x128   :  { %229 = vsyncpa [#allocation3], 1 }
 0x129   :  { %230 = vsyncpa [#allocation6], 1 }
 0x12a   :  { %231 = vsyncpa [#allocation4], 1 }

// kernel: _focal_conv2d_impl.1
= control target key start
LH: loop header
LB: loop body
LE: loop exit
PB: predicated region body
PF: predicated region fallthrough
CT: control target
= control target key end

     0   :  { %s1094_s9 = smov 0   ;;  %s1096_s10 = smov 0   ;;  %s1278_s0 = inlined_call_operand.vmem [shape: bf16[8,8,128], index: 0, kind: input, shape index: {}]   ;;  %s1279_s1 = inlined_call_operand.vmem [shape: bf16[3,128,128], index: 1, kind: input, shape index: {}]   ;;  %s1280_s2 = inlined_call_operand.vmem [shape: f32[32,128], index: 2, kind: output, shape index: {}]  }
   0x1   :  { %s1098_s11 = smov 0  }
   0x2 LB: > { %s24_s12 = sadd.s32 1, %s1070_s10  ;;  %p829_p0 = scmp.ge.s32.totalorder %s1074_s11, 1  ;;  %s1074_s11 = sphi %s1098_s11, %s12_s11   ;;  %s1070_s10 = sphi %s1096_s10, %s1288_s10   ;;  %s1066_s9 = sphi %s1094_s9, %s1287_s9  }
   0x3   : > { %p26_p1 = scmp.ge.s32.totalorder %s24_s12, 2  ;;  %p136_p2 = scmp.lt.s32.totalorder %s1074_s11, 3 }
   0x5   : > { %s1290_s12 = smov (%p26_p1, %s24_s12), 0  ;;  %p137_p3 = pnand %p829_p0, %p136_p2 }
   0x6   : > { %v1024_v0 = vld [vmem:[%s1279_s1] sm:$0xff] (!%p137_p3)   ;;  %v1076_v1 = vmov (!%p137_p3), 0.0   ;;  %v1025_v2 = vld [vmem:[%s1279_s1 + $0x8] sm:$0xff] (!%p137_p3)   ;;  %vm1077_vm0 = vmmov (!%p137_p3), 0   ;;  %s830_s17 = sshll.u32 (!%p137_p3), %s1066_s9, 2  ;;  %v1026_v3 = vld [vmem:[%s1279_s1 + $0x10] sm:$0xff] (!%p137_p3)   ;;  %v330_v8 = vlaneseq (!%p137_p3) }
   0x7   : > { %140 = sbr.rel (%p137_p3) target bundleno = 288 (0x120), region = 28  ;;  %951 = vmatprep.subr.bf16.mxu0 (!%p137_p3), %v1076_v1  ;;  %931 = vmatprep.subr.bf16.mxu1 (!%p137_p3), %v1076_v1  ;;  %p166_p4 = scmp.lt.s32.totalorder (!%p137_p3), %s830_s17, 7  ;;  %v1032_v4 = vld [vmem:[%s1279_s1 + $0x40] sm:$0xff] (!%p137_p3)   ;;  %v1027_v5 = vld [vmem:[%s1279_s1 + $0x18] sm:$0xff] (!%p137_p3)   ;;  %v1078_v6 = vmov (!%p137_p3), 1983009808  }
   0x8   : > { %952 = vmatpush3.bf16.msra.mxu0 (!%p137_p3), %v1024_v0  ;;  %967 = vmatprep.mubr.msk.bf16.mxu0 (!%p137_p3), %vm1077_vm0, %v1076_v1  ;;  %v328_v7 = vunpack.c.l.s4 (!%p137_p3), %v1078_v6  ;;  %v1036_v9 = vld [vmem:[%s1279_s1 + $0x48] sm:$0xff] (!%p137_p3)   ;;  %v1028_v10 = vld [vmem:[%s1279_s1 + $0x20] sm:$0xff] (!%p137_p3)   ;;  %v1038_v11 = vld [vmem:[%s1279_s1 + $0x50] sm:$0xff] (!%p137_p3)   ;;  %v331_v13 = vshrl.u32 (!%p137_p3), %v330_v8, 7  ;;  %vm245_vm1 = vsmask.f32 (!%p137_p3), 1280 }
   0x9   : > { %953 = vmatprep.subr.bf16.mxu0 (!%p137_p3), %v1076_v1  ;;  %947 = vmatprep.mubr.msk.bf16.mxu1 (!%p137_p3), %vm1077_vm0, %v1076_v1  ;;  %v1029_v14 = vld [vmem:[%s1279_s1 + $0x28] sm:$0xff] (!%p137_p3)   ;;  %v1040_v16 = vld [vmem:[%s1279_s1 + $0x58] sm:$0xff] (!%p137_p3)   ;;  %v1030_v19 = vld [vmem:[%s1279_s1 + $0x30] sm:$0xff] (!%p137_p3)   ;;  %vm246_vm2 = vsmask.f32 (!%p137_p3), 3336  ;;  %vm583_vm8 = vcmask (!%p137_p3), 1040384  }
   0xa   : > { %932 = vmatpush3.bf16.msra.mxu1 (!%p137_p3), %v1032_v4  ;;  %v329_v12 = vunpack.c.0.s8 (!%p137_p3), %v328_v7  ;;  %v1042_v20 = vld [vmem:[%s1279_s1 + $0x60] sm:$0xff] (!%p137_p3)   ;;  %v1031_v21 = vld [vmem:[%s1279_s1 + $0x38] sm:$0xff] (!%p137_p3)   ;;  %v1044_v22 = vld [vmem:[%s1279_s1 + $0x68] sm:$0xff] (!%p137_p3)   ;;  %vm248_vm4 = vsmask.f32 (!%p137_p3), 5392  ;;  %vm584_vm9 = vcmask (!%p137_p3), 1042434  }
   0xb   : > { %933 = vmatprep.subr.bf16.mxu1 (!%p137_p3), %v1076_v1  ;;  %v1035_v29 = vld [vmem:[%s1279_s1 + $0x80] sm:$0xff] (!%p137_p3)   ;;  %vm247_vm3 = vmor (!%p137_p3), %vm245_vm1, %vm246_vm2  ;;  %vm250_vm5 = vsmask.f32 (!%p137_p3), 7448  ;;  %v1046_v39 = vld [vmem:[%s1279_s1 + $0x70] sm:$0xff] (!%p137_p3)   ;;  %vm586_vm11 = vcmask (!%p137_p3), 1044484   ;;  %vm588_vm13 = vcmask (!%p137_p3), 1046534  }
   0xc   : > { %954 = vmatpush3.bf16.msra.mxu0 (!%p137_p3), %v1025_v2  ;;  %v1164_v17 = vsub.s32 (!%p137_p3), %v329_v12, %v331_v13  ;;  %vm1195_vm6 = vmor (!%p137_p3), %vm247_vm3, %vm248_vm4  ;;  %v1037_v53 = vld [vmem:[%s1279_s1 + $0x88] sm:$0xff] (!%p137_p3)   ;;  %v1048_v59 = vld [vmem:[%s1279_s1 + $0x78] sm:$0xff] (!%p137_p3)   ;;  %s832_s18 = sshll.u32 (!%p137_p3), %s1066_s9, 1 }
   0xd   : > { %955 = vmatprep.subr.bf16.mxu0 (!%p137_p3), %v1076_v1  ;;  %vm1206_vm7 = vmor (!%p137_p3), %vm1195_vm6, %vm250_vm5  ;;  %v1039_v7 = vld [vmem:[%s1279_s1 + $0x90] sm:$0xff] (!%p137_p3)   ;;  %p176_p5 = scmp.lt.s32.totalorder (!%p137_p3), %s832_s18, 3 }
   0xe   : > { %s1292_s17 = smov (!%p166_p4, %s830_s17), 7  ;;  %934 = vmatpush3.bf16.msra.mxu1 %v1036_v9  ;;  %vm585_vm10 = vmor %vm583_vm8, %vm584_vm9 }
   0xf   : > { %s831_s20 = sshll.u32 %s1292_s17, 2  ;;  %935 = vmatprep.subr.bf16.mxu1 %v1076_v1  ;;  %vm1240_vm12 = vmor %vm585_vm10, %vm586_vm11  ;;  %s1294_s18 = smov (!%p176_p5, %s832_s18), 3 }
  0x10   : > { %s1138_s25 = scalar_lea.vmem %s1278_s0, %s831_s20  ;;  %956 = vmatpush3.bf16.msra.mxu0 %v1026_v3  ;;  %vm589_vm14 = vmor %vm1240_vm12, %vm588_vm13  ;;  %s833_s19 = sshll.u32 %s1294_s18, 3 }
  0x11   : > { %957 = vmatprep.subr.bf16.mxu0 %v1076_v1  ;;  %v1050_v15 = vld.sshfl [vmem:[%s1138_s25] sm:$0xf pattern:$0x76325410]  ;;  %s182_s22 = scalar_lea.vmem %s1280_s2, %s833_s19 }
  0x12   : > { %936 = vmatpush3.bf16.msra.mxu1 %v1038_v11  ;;  %v1051_v18 = vld.sshfl [vmem:[%s1138_s25 + $0x8] sm:$0xf pattern:$0x76325410] }
  0x13   : > { %937 = vmatprep.subr.bf16.mxu1 %v1076_v1  ;;  %v834_v23 = vld.sshfl [vmem:[%s1138_s25] sm:$0x13 pattern:$0x76325410]  ;;  %v452_v28 = vcombine.low %v1050_v15, %v1051_v18 }
  0x14   : > { %958 = vmatpush3.bf16.msra.mxu0 %v1027_v5  ;;  %v835_v24 = vld.sshfl [vmem:[%s1138_s25 + $0x4] sm:$0x13 pattern:$0x76325410]  ;;  %v220_v25 = vcombine.high %v834_v23, %v834_v23  ;;  %v253_v33 = vshrl.u32 %v834_v23, 16  ;;  %v256_v34 = vshll.u32 %v834_v23, 16 }
  0x15   : > { %959 = vmatprep.subr.bf16.mxu0 %v1076_v1  ;;  %v836_v26 = vld.sshfl [vmem:[%s1138_s25 + $0x8] sm:$0x13 pattern:$0x76325410]  ;;  %v228_v27 = vcombine.high %v835_v24, %v835_v24  ;;  %v267_v36 = vshrl.u32 %v835_v24, 16  ;;  %v270_v37 = vshll.u32 %v835_v24, 16 }
  0x16   : > { %938 = vmatpush3.bf16.msra.mxu1 %v1040_v16  ;;  %v837_v30 = vld.sshfl [vmem:[%s1138_s25 + $0xc] sm:$0x13 pattern:$0x76325410]  ;;  %v236_v31 = vcombine.high %v836_v26, %v836_v26  ;;  %v262_v35 = vshll.u32 %v220_v25, 16  ;;  %v255_v41 = vrot.slane %v253_v33, 6 }
  0x17   : > { %939 = vmatprep.subr.bf16.mxu1 %v1076_v1  ;;  %v244_v32 = vcombine.high %v837_v30, %v837_v30  ;;  %v276_v38 = vshll.u32 %v228_v27, 16  ;;  %v258_v42 = vrot.slane %v256_v34, 7  ;;  %v281_v43 = vshrl.u32 %v836_v26, 16 }
  0x18   : > { %960 = vmatpush3.bf16.msra.mxu0 %v1028_v10  ;;  %v284_v44 = vshll.u32 %v836_v26, 16  ;;  %v264_v45 = vrot.slane %v262_v35, 7  ;;  %v269_v46 = vrot.slane %v267_v36, 6  ;;  %v272_v47 = vrot.slane %v270_v37, 7  ;;  %v1045_v37 = vld [vmem:[%s1279_s1 + $0xa8] sm:$0xff]  }
  0x19   : > { %961 = vmatprep.subr.bf16.mxu0 %v1076_v1  ;;  %v278_v48 = vrot.slane %v276_v38, 7  ;;  %v259_v49 = vor.u32 %v258_v42, %v255_v41  ;;  %v283_v50 = vrot.slane %v281_v43, 6  ;;  %v290_v52 = vshll.u32 %v236_v31, 16  ;;  %v1043_v31 = vld [vmem:[%s1279_s1 + $0xa0] sm:$0xff]  }
  0x1a   : > { %940 = vmatpush3.bf16.msra.mxu1 %v1042_v20  ;;  %v286_v51 = vrot.slane %v284_v44, 7  ;;  %v273_v55 = vor.u32 %v272_v47, %v269_v46  ;;  %v295_v56 = vshrl.u32 %v837_v30, 16  ;;  %v298_v57 = vshll.u32 %v837_v30, 16  ;;  %v1047_v44 = vld [vmem:[%s1279_s1 + $0xb0] sm:$0xff]   ;;  %v1049_v47 = vld [vmem:[%s1279_s1 + $0xb8] sm:$0xff]  }
  0x1b   : > { %941 = vmatprep.subr.bf16.mxu1 %v1076_v1  ;;  %v304_v58 = vshll.u32 %v244_v32, 16  ;;  %v260_v60 = vrot.slane %v259_v49, 2  ;;  %v292_v63 = vrot.slane %v290_v52, 7 }
  0x1c   : > { %962 = vmatpush3.bf16.msra.mxu0 %v1029_v14  ;;  %v287_v61 = vor.u32 %v286_v51, %v283_v50  ;;  %v274_v62 = vrot.slane %v273_v55, 2  ;;  %v297_v0 = vrot.slane %v295_v56, 6  ;;  %v300_v2 = vrot.slane %v298_v57, 7 }
  0x1d   : > { %963 = vmatprep.subr.bf16.mxu0 %v1076_v1  ;;  %v870_v3 = vld.sshfl [vmem:[%s1138_s25] sm:$0x12 pattern:$0x76325410]  ;;  %v265_v4 = vsel %vm1206_vm7, %v260_v60, %v264_v45  ;;  %v306_v10 = vrot.slane %v304_v58, 7 }
  0x1e   : > { %942 = vmatpush3.bf16.msra.mxu1 %v1044_v22  ;;  %v288_v5 = vrot.slane %v287_v61, 2  ;;  %v871_v6 = vld.sshfl [vmem:[%s1138_s25 + $0x4] sm:$0x12 pattern:$0x76325410]  ;;  %v279_v8 = vsel %vm1206_vm7, %v274_v62, %v278_v48  ;;  %v301_v9 = vor.u32 %v300_v2, %v297_v0  ;;  %v558_v16 = vcombine.high %v870_v3, %v870_v3 }
  0x1f   : > { %943 = vmatprep.subr.bf16.mxu1 %v1076_v1  ;;  %v872_v11 = vld.sshfl [vmem:[%s1138_s25 + $0x8] sm:$0x12 pattern:$0x76325410]  ;;  %v325_v12 = vcombine.low %v265_v4, %v279_v8  ;;  %v566_v18 = vcombine.high %v871_v6, %v871_v6  ;;  %v874_v26 = vrot.slane %v870_v3, 9 }
  0x20   : > { %964 = vmatpush3.bf16.msra.mxu0 %v1030_v19  ;;  %v873_v13 = vld.sshfl [vmem:[%s1138_s25 + $0xc] sm:$0x12 pattern:$0x76325410]  ;;  %v293_v14 = vsel %vm1206_vm7, %v288_v5, %v292_v63  ;;  %v302_v15 = vrot.slane %v301_v9, 2  ;;  %v1041_v19 = vld [vmem:[%s1279_s1 + $0x98] sm:$0xff]  }
  0x21   : > { %965 = vmatprep.subr.bf16.mxu0 %v1076_v1  ;;  %v582_v22 = vcombine.high %v873_v13, %v873_v13  ;;  %v333_v24 = vrot.slane %v325_v12, %v1164_v17  ;;  %v596_v30 = vrot.slane %v566_v18, 7  ;;  %v876_v32 = vrot.slane %v872_v11, 9 }
  0x22   : > { %944 = vmatpush3.bf16.msra.mxu1 %v1046_v39  ;;  %v307_v20 = vsel %vm1206_vm7, %v302_v15, %v306_v10  ;;  %v877_v34 = vrot.slane %v873_v13, 9 }
  0x23   : > { %945 = vmatprep.subr.bf16.mxu1 %v1076_v1  ;;  %v326_v23 = vcombine.low %v293_v14, %v307_v20  ;;  %v604_v35 = vrot.slane %v582_v22, 7 }
  0x24   : > { %966 = vmatpush3.bf16.msra.mxu0 %v1031_v21  ;;  %v574_v21 = vcombine.high %v872_v11, %v872_v11 }
  0x25   : > { %971 = vmatprep.subr.bf16.mxu0 %v1076_v1  ;;  %v340_v27 = vrot.slane %v326_v23, %v1164_v17  ;;  %v605_v41 = vsel %vm589_vm14, %v877_v34, %v604_v35 }
  0x26   : > { %946 = vmatpush3.bf16.msra.mxu1 %v1048_v59  ;;  %v600_v33 = vrot.slane %v574_v21, 7 }
  0x27   : > { %968 = vmatmul.mubr.bf16.vlgmr.msra.gmra.mrb[0].mxu0 %v452_v28  ;;  %v592_v28 = vrot.slane %v558_v16, 7  ;;  %v341_v36 = vcombine.low %v333_v24, %v340_v27 }
  0x28   : > { %972 = vmatpush3.bf16.msra.mxu0 %v1035_v29  ;;  %987 = vmatprep.mubr.msk.bf16.mxu0 %vm1077_vm0, %v1076_v1  ;;  %v875_v29 = vrot.slane %v871_v6, 9  ;;  %v601_v40 = vsel %vm589_vm14, %v876_v32, %v600_v33 }
  0x29   : > { %973 = vmatprep.subr.bf16.mxu0 %v1076_v1  ;;  %948 = vmatmul.mubr.bf16.vlgmr.msra.gmra.mrb[0].mxu1 %v341_v36  ;;  %v593_v38 = vsel %vm589_vm14, %v874_v26, %v592_v28  ;;  %v624_v43 = vcombine.low %v601_v40, %v605_v41 }
  0x2a   : > { %v597_v39 = vsel %vm589_vm14, %v875_v29, %v596_v30 }
  0x2b   : > { %v623_v42 = vcombine.low %v593_v38, %v597_v39  ;;  %v638_v46 = vrot.slane %v624_v43, %v1164_v17 }
  0x2c   : > { %974 = vmatpush3.bf16.msra.mxu0 %v1037_v53 }
  0x2d   : > { %975 = vmatprep.subr.bf16.mxu0 %v1076_v1  ;;  %v631_v45 = vrot.slane %v623_v42, %v1164_v17 }
  0x2f   : > { %v639_v48 = vcombine.low %v631_v45, %v638_v46 }
  0x30   : > { %976 = vmatpush3.bf16.msra.mxu0 %v1039_v7 }
  0x31   : > { %977 = vmatprep.subr.bf16.mxu0 %v1076_v1 }
  0x34   : > { %978 = vmatpush3.bf16.msra.mxu0 %v1041_v19 }
  0x35   : > { %979 = vmatprep.subr.bf16.mxu0 %v1076_v1 }
  0x38   : > { %980 = vmatpush3.bf16.msra.mxu0 %v1043_v31 }
  0x39   : > { %981 = vmatprep.subr.bf16.mxu0 %v1076_v1 }
  0x3c   : > { %982 = vmatpush3.bf16.msra.mxu0 %v1045_v37 }
  0x3d   : > { %983 = vmatprep.subr.bf16.mxu0 %v1076_v1 }
  0x40   : > { %984 = vmatpush3.bf16.msra.mxu0 %v1047_v44 }
  0x41   : > { %985 = vmatprep.subr.bf16.mxu0 %v1076_v1 }
  0x44   : > { %986 = vmatpush3.bf16.msra.mxu0 %v1049_v47 }
  0x47   : > { %988 = vmatmul.mubr.bf16.vlgmr.msra.gmra.mrb[0].mxu0 %v639_v48 }
  0xfc   : > { %v425_v49 = vpop.f32.mrb[0].mxu1 }
  0xfd   : > { %v949_v50 = vpop.f32.mrb[1].mxu1 }
  0xfe   : > { %v428_v51 = vpop.f32.mrb[2].mxu1 }
  0xff   : > { %v950_v52 = vpop.f32.mrb[3].mxu1 }
 0x11a   : > { %v723_v17 = vpop.f32.mrb[0].mxu0 }
 0x11b   : > { %v991_v53 = vadd.f32 %v723_v17, %v425_v49  ;;  %v989_v54 = vpop.f32.mrb[1].mxu0 }
 0x11c   : > { %v726_v55 = vpop.f32.mrb[2].mxu0 }
 0x11d   : > { %732 = vst [vmem:[%s182_s22] sm:$0xff] %v991_v53  ;;  %v992_v1 = vadd.f32 %v726_v55, %v428_v51  ;;  %v990_v56 = vpop.f32.mrb[3].mxu0 }
 0x11f   : > { %733 = vst [vmem:[%s182_s22 + $0x8] sm:$0xff] %v992_v1 }
 0x120 PF: > { %s12_s11 = sadd.s32 1, %s1074_s11   ;;  %s1287_s9 = smov %s1070_s10 }
 0x121   : > { %p9_p6 = scmp.ge.s32.totalorder %s12_s11, 4   ;;  %s1288_s10 = smov %s1290_s12 }
 0x123   :  { %11 = sbr.rel (!%p9_p6) target bundleno = 2 (0x2), region = 63 }

</bundles_post_ra>
